<compile_context>
chip_gen: v7x
topology: tpu7x:2x2x1
jax: 0.10.0
libtpu: 0.0.40
codegen_flags: <defaults>
</compile_context>

<pallas_src>
import jax
import jax.numpy as jnp
from jax import lax
from jax.experimental import pallas as pl
from jax.experimental.pallas import tpu as pltpu


def _divergence_kernel(lam_ref, x_ref, o_ref, sp_ref):
    # lam_ref: SMEM (C//4,)            per-channel lambdas1x
    # x_ref  : VMEM (BN, C, H, W)      unpadded input block (BN batch elems)
    # o_ref  : VMEM (BN, 2, H+2, W+2)  divergence output block
    # sp_ref : VMEM (4, BN, H+4, W+4)  scratch: zero-padded channel-summed planes
    BN, C, H, W = x_ref.shape
    cq = C // 4
    Ho, Wo = H + 2, W + 2

    # ---- channel reduction (vectorized; weighted for group 1) -------------
    # Group 1: s1 = sum_c lambdas1x[c] * x[:, c]          (x-derivative, scaled)
    s1 = jnp.zeros((BN, H, W), jnp.float32)
    for k in range(cq):                      # cq static; per-channel SMEM scalar
        s1 = s1 + lam_ref[k] * x_ref[:, k].astype(jnp.float32)
    # Groups 2-4: plain channel sums (unscaled), vectorized reduce over channels.
    s2 = jnp.sum(x_ref[:, cq:2 * cq], axis=1, dtype=jnp.float32)
    s3 = jnp.sum(x_ref[:, 2 * cq:3 * cq], axis=1, dtype=jnp.float32)
    s4 = jnp.sum(x_ref[:, 3 * cq:4 * cq], axis=1, dtype=jnp.float32)

    # ---- in-kernel halo: place sums into zero-padded scratch planes -------
    sp_ref[...] = jnp.zeros_like(sp_ref)
    sp_ref[0, :, 2:2 + H, 2:2 + W] = s1
    sp_ref[1, :, 2:2 + H, 2:2 + W] = s2
    sp_ref[2, :, 2:2 + H, 2:2 + W] = s3
    sp_ref[3, :, 2:2 + H, 2:2 + W] = s4

    # ---- shifted differences read directly off the scratch ref ------------
    # x-derivative kernel [[0,0,0],[-1,0,1],[0,0,0]], padding=2:
    #   y[i,j] = spad[i+1, j+2] - spad[i+1, j]
    # y-derivative kernel [[0,1,0],[0,0,0],[0,-1,0]], padding=2:
    #   y[i,j] = spad[i,   j+1] - spad[i+2, j+1]
    out1 = (sp_ref[0, :, 1:1 + Ho, 2:2 + Wo] - sp_ref[0, :, 1:1 + Ho, 0:Wo]
            + sp_ref[1, :, 0:Ho, 1:1 + Wo] - sp_ref[1, :, 2:2 + Ho, 1:1 + Wo])
    out2 = (sp_ref[2, :, 1:1 + Ho, 2:2 + Wo] - sp_ref[2, :, 1:1 + Ho, 0:Wo]
            + sp_ref[3, :, 0:Ho, 1:1 + Wo] - sp_ref[3, :, 2:2 + Ho, 1:1 + Wo])

    o_ref[:, 0] = out1.astype(o_ref.dtype)
    o_ref[:, 1] = out2.astype(o_ref.dtype)


def divergence2d(x, lambdas1x):
    """x: (N, C, H, W) f32; lambdas1x: (1, C//4, 1, 1) f32 -> (N, 2, H+2, W+2)."""
    N, C, H, W = x.shape
    assert C % 4 == 0, "Divergence2d requires the channel count divisible by 4"
    cq = C // 4
    Ho, Wo = H + 2, W + 2
    Hp, Wp = H + 4, W + 4

    lam = lambdas1x.reshape(cq).astype(jnp.float32)

    # Batch-block size: largest divisor of N whose input block stays under
    # ~4 MiB (leaves ample room for double-buffering under the VMEM limit).
    per_batch_bytes = C * H * W * x.dtype.itemsize
    bn = 1
    for cand in range(1, N + 1):
        if N % cand == 0 and cand * per_batch_bytes <= (4 << 20):
            bn = cand
    grid = (N // bn,)

    return pl.pallas_call(
        _divergence_kernel,
        out_shape=jax.ShapeDtypeStruct((N, 2, Ho, Wo), x.dtype),
        grid_spec=pltpu.PrefetchScalarGridSpec(
            num_scalar_prefetch=0,
            grid=grid,
            in_specs=[
                pl.BlockSpec(memory_space=pltpu.MemorySpace.SMEM),      # lambdas
                pl.BlockSpec((bn, C, H, W), lambda b: (b, 0, 0, 0)),    # unpadded x
            ],
            out_specs=pl.BlockSpec((bn, 2, Ho, Wo), lambda b: (b, 0, 0, 0)),
            scratch_shapes=[pltpu.VMEM((4, bn, Hp, Wp), jnp.float32)],
        ),
        compiler_params=pltpu.CompilerParams(
            dimension_semantics=("parallel",),
            vmem_limit_bytes=48 * 1024 * 1024,
        ),
    )(lam, x)


def _reference(x, lambdas1x):
    """Pure-JAX reference using lax conv, mirroring the PyTorch forward."""
    N, C, H, W = x.shape
    cq = C // 4
    kx = jnp.array([[0, 0, 0], [-1, 0, 1], [0, 0, 0]], jnp.float32)
    ky = jnp.array([[0, 1, 0], [0, 0, 0], [0, -1, 0]], jnp.float32)
    wx = jnp.broadcast_to(kx, (1, cq, 3, 3))
    wy = jnp.broadcast_to(ky, (1, cq, 3, 3))
    lam = lambdas1x.reshape(1, cq, 1, 1)

    def conv(inp, w):
        return jax.lax.conv_general_dilated(
            inp, w, (1, 1), [(2, 2), (2, 2)],
            dimension_numbers=("NCHW", "OIHW", "NCHW"))

    o1 = conv(x[:, :cq], wx * lam) + conv(x[:, cq:2 * cq], wy)
    o2 = conv(x[:, 2 * cq:3 * cq], wx) + conv(x[:, 3 * cq:], wy)
    return jnp.concatenate([o1, o2], axis=1)


if __name__ == "__main__":
    N, C, H, W = 2, 8, 16, 16
    n_input_channels = C
    n_output_channels = 4
    factor = n_input_channels // n_output_channels
    lambda_ = 1.0 / (factor * 2)

    key = jax.random.PRNGKey(0)
    x = jax.random.normal(key, (N, C, H, W), dtype=jnp.float32)
    # Deterministic parameter init, identical to the PyTorch module's __init__:
    # Parameter(torch.ones(1, C//4, 1, 1)) * lambda_
    lambdas1x = jnp.ones((1, C // 4, 1, 1), jnp.float32) * lambda_

    out = divergence2d(x, lambdas1x)
    out = jax.block_until_ready(out)

    ref = _reference(x, lambdas1x)
    assert out.shape == (N, 2, H + 2, W + 2), out.shape
    assert jnp.allclose(out, ref, atol=1e-5, rtol=1e-5), float(
        jnp.max(jnp.abs(out - ref)))
    print("KERNEL_OK")
</pallas_src>

<mosaic_0001>
module attributes {stable_mosaic.version = 11 : i64} {
  func.func @_divergence_kernel(%arg0: i32, %arg1: memref<2xf32, #tpu.memory_space<smem>>, %arg2: memref<2x8x16x16xf32, #tpu.memory_space<vmem>>, %arg3: memref<2x2x18x18xf32, #tpu.memory_space<vmem>>, %arg4: memref<4x2x20x20xf32, #tpu.memory_space<vmem>>) attributes {dimension_semantics = [#tpu.dimension_semantics<parallel>], iteration_bounds = array<i64: 1>, scalar_prefetch = 0 : i64, scratch_operands = 1 : i64, tpu.core_type = #tpu.core_type<tc>, window_params = [{transform_indices = @transform_0, window_bounds = array<i64: 2>}, {transform_indices = @transform_1, window_bounds = array<i64: 2, 8, 16, 16>}, {transform_indices = @transform_2, window_bounds = array<i64: 2, 2, 18, 18>}]} {
    %cst = arith.constant 0.000000e+00 : f32
    %0 = vector.broadcast %cst : f32 to vector<2x16x16xf32>
    %c0 = arith.constant 0 : index
    %1 = memref.load %arg1[%c0] : memref<2xf32, #tpu.memory_space<smem>>
    %c0_0 = arith.constant 0 : index
    %c0_1 = arith.constant 0 : index
    %c0_2 = arith.constant 0 : index
    %c0_3 = arith.constant 0 : index
    %2 = vector.load %arg2[%c0_0, %c0_1, %c0_2, %c0_3] : memref<2x8x16x16xf32, #tpu.memory_space<vmem>>, vector<2x1x16x16xf32>
    %3 = vector.shape_cast %2 : vector<2x1x16x16xf32> to vector<2x16x16xf32>
    %4 = vector.broadcast %1 : f32 to vector<2x16x16xf32>
    %5 = arith.mulf %4, %3 : vector<2x16x16xf32>
    %6 = arith.addf %0, %5 : vector<2x16x16xf32>
    %c1 = arith.constant 1 : index
    %7 = memref.load %arg1[%c1] : memref<2xf32, #tpu.memory_space<smem>>
    %c0_4 = arith.constant 0 : index
    %c1_5 = arith.constant 1 : index
    %c0_6 = arith.constant 0 : index
    %c0_7 = arith.constant 0 : index
    %8 = vector.load %arg2[%c0_4, %c1_5, %c0_6, %c0_7] : memref<2x8x16x16xf32, #tpu.memory_space<vmem>>, vector<2x1x16x16xf32>
    %9 = vector.shape_cast %8 : vector<2x1x16x16xf32> to vector<2x16x16xf32>
    %10 = vector.broadcast %7 : f32 to vector<2x16x16xf32>
    %11 = arith.mulf %10, %9 : vector<2x16x16xf32>
    %12 = arith.addf %6, %11 : vector<2x16x16xf32>
    %c0_8 = arith.constant 0 : index
    %c2 = arith.constant 2 : index
    %c0_9 = arith.constant 0 : index
    %c0_10 = arith.constant 0 : index
    %13 = vector.load %arg2[%c0_8, %c2, %c0_9, %c0_10] : memref<2x8x16x16xf32, #tpu.memory_space<vmem>>, vector<2x2x16x16xf32>
    %cst_11 = arith.constant dense<0.000000e+00> : vector<2x16x16xf32>
    %14 = vector.multi_reduction <add>, %13, %cst_11 [1] : vector<2x2x16x16xf32> to vector<2x16x16xf32>
    %c0_12 = arith.constant 0 : index
    %c4 = arith.constant 4 : index
    %c0_13 = arith.constant 0 : index
    %c0_14 = arith.constant 0 : index
    %15 = vector.load %arg2[%c0_12, %c4, %c0_13, %c0_14] : memref<2x8x16x16xf32, #tpu.memory_space<vmem>>, vector<2x2x16x16xf32>
    %cst_15 = arith.constant dense<0.000000e+00> : vector<2x16x16xf32>
    %16 = vector.multi_reduction <add>, %15, %cst_15 [1] : vector<2x2x16x16xf32> to vector<2x16x16xf32>
    %c0_16 = arith.constant 0 : index
    %c6 = arith.constant 6 : index
    %c0_17 = arith.constant 0 : index
    %c0_18 = arith.constant 0 : index
    %17 = vector.load %arg2[%c0_16, %c6, %c0_17, %c0_18] : memref<2x8x16x16xf32, #tpu.memory_space<vmem>>, vector<2x2x16x16xf32>
    %cst_19 = arith.constant dense<0.000000e+00> : vector<2x16x16xf32>
    %18 = vector.multi_reduction <add>, %17, %cst_19 [1] : vector<2x2x16x16xf32> to vector<2x16x16xf32>
    %cst_20 = arith.constant 0.000000e+00 : f32
    %19 = vector.broadcast %cst_20 : f32 to vector<4x2x20x20xf32>
    %c0_21 = arith.constant 0 : index
    %c0_22 = arith.constant 0 : index
    %c0_23 = arith.constant 0 : index
    %c0_24 = arith.constant 0 : index
    %20 = vector.load %arg4[%c0_21, %c0_22, %c0_23, %c0_24] : memref<4x2x20x20xf32, #tpu.memory_space<vmem>>, vector<4x2x20x20xf32>
    tpu.vector_store %arg4[%c0_21, %c0_22, %c0_23, %c0_24], %19 {strides = array<i32>} : memref<4x2x20x20xf32, #tpu.memory_space<vmem>>, vector<4x2x20x20xf32>,
    %c0_25 = arith.constant 0 : index
    %c0_26 = arith.constant 0 : index
    %c2_27 = arith.constant 2 : index
    %c2_28 = arith.constant 2 : index
    %21 = vector.load %arg4[%c0_25, %c0_26, %c2_27, %c2_28] : memref<4x2x20x20xf32, #tpu.memory_space<vmem>>, vector<1x2x16x16xf32>
    %22 = vector.shape_cast %21 : vector<1x2x16x16xf32> to vector<2x16x16xf32>
    %23 = vector.shape_cast %12 : vector<2x16x16xf32> to vector<1x2x16x16xf32>
    tpu.vector_store %arg4[%c0_25, %c0_26, %c2_27, %c2_28], %23 {strides = array<i32>} : memref<4x2x20x20xf32, #tpu.memory_space<vmem>>, vector<1x2x16x16xf32>,
    %c1_29 = arith.constant 1 : index
    %c0_30 = arith.constant 0 : index
    %c2_31 = arith.constant 2 : index
    %c2_32 = arith.constant 2 : index
    %24 = vector.load %arg4[%c1_29, %c0_30, %c2_31, %c2_32] : memref<4x2x20x20xf32, #tpu.memory_space<vmem>>, vector<1x2x16x16xf32>
    %25 = vector.shape_cast %24 : vector<1x2x16x16xf32> to vector<2x16x16xf32>
    %26 = vector.shape_cast %14 : vector<2x16x16xf32> to vector<1x2x16x16xf32>
    tpu.vector_store %arg4[%c1_29, %c0_30, %c2_31, %c2_32], %26 {strides = array<i32>} : memref<4x2x20x20xf32, #tpu.memory_space<vmem>>, vector<1x2x16x16xf32>,
    %c2_33 = arith.constant 2 : index
    %c0_34 = arith.constant 0 : index
    %c2_35 = arith.constant 2 : index
    %c2_36 = arith.constant 2 : index
    %27 = vector.load %arg4[%c2_33, %c0_34, %c2_35, %c2_36] : memref<4x2x20x20xf32, #tpu.memory_space<vmem>>, vector<1x2x16x16xf32>
    %28 = vector.shape_cast %27 : vector<1x2x16x16xf32> to vector<2x16x16xf32>
    %29 = vector.shape_cast %16 : vector<2x16x16xf32> to vector<1x2x16x16xf32>
    tpu.vector_store %arg4[%c2_33, %c0_34, %c2_35, %c2_36], %29 {strides = array<i32>} : memref<4x2x20x20xf32, #tpu.memory_space<vmem>>, vector<1x2x16x16xf32>,
    %c3 = arith.constant 3 : index
    %c0_37 = arith.constant 0 : index
    %c2_38 = arith.constant 2 : index
    %c2_39 = arith.constant 2 : index
    %30 = vector.load %arg4[%c3, %c0_37, %c2_38, %c2_39] : memref<4x2x20x20xf32, #tpu.memory_space<vmem>>, vector<1x2x16x16xf32>
    %31 = vector.shape_cast %30 : vector<1x2x16x16xf32> to vector<2x16x16xf32>
    %32 = vector.shape_cast %18 : vector<2x16x16xf32> to vector<1x2x16x16xf32>
    tpu.vector_store %arg4[%c3, %c0_37, %c2_38, %c2_39], %32 {strides = array<i32>} : memref<4x2x20x20xf32, #tpu.memory_space<vmem>>, vector<1x2x16x16xf32>,
    %c0_40 = arith.constant 0 : index
    %c0_41 = arith.constant 0 : index
    %c1_42 = arith.constant 1 : index
    %c2_43 = arith.constant 2 : index
    %33 = vector.load %arg4[%c0_40, %c0_41, %c1_42, %c2_43] : memref<4x2x20x20xf32, #tpu.memory_space<vmem>>, vector<1x2x18x18xf32>
    %34 = vector.shape_cast %33 : vector<1x2x18x18xf32> to vector<2x18x18xf32>
    %c0_44 = arith.constant 0 : index
    %c0_45 = arith.constant 0 : index
    %c1_46 = arith.constant 1 : index
    %c0_47 = arith.constant 0 : index
    %35 = vector.load %arg4[%c0_44, %c0_45, %c1_46, %c0_47] : memref<4x2x20x20xf32, #tpu.memory_space<vmem>>, vector<1x2x18x18xf32>
    %36 = vector.shape_cast %35 : vector<1x2x18x18xf32> to vector<2x18x18xf32>
    %37 = arith.subf %34, %36 : vector<2x18x18xf32>
    %c1_48 = arith.constant 1 : index
    %c0_49 = arith.constant 0 : index
    %c0_50 = arith.constant 0 : index
    %c1_51 = arith.constant 1 : index
    %38 = vector.load %arg4[%c1_48, %c0_49, %c0_50, %c1_51] : memref<4x2x20x20xf32, #tpu.memory_space<vmem>>, vector<1x2x18x18xf32>
    %39 = vector.shape_cast %38 : vector<1x2x18x18xf32> to vector<2x18x18xf32>
    %40 = arith.addf %37, %39 : vector<2x18x18xf32>
    %c1_52 = arith.constant 1 : index
    %c0_53 = arith.constant 0 : index
    %c2_54 = arith.constant 2 : index
    %c1_55 = arith.constant 1 : index
    %41 = vector.load %arg4[%c1_52, %c0_53, %c2_54, %c1_55] : memref<4x2x20x20xf32, #tpu.memory_space<vmem>>, vector<1x2x18x18xf32>
    %42 = vector.shape_cast %41 : vector<1x2x18x18xf32> to vector<2x18x18xf32>
    %43 = arith.subf %40, %42 : vector<2x18x18xf32>
    %c2_56 = arith.constant 2 : index
    %c0_57 = arith.constant 0 : index
    %c1_58 = arith.constant 1 : index
    %c2_59 = arith.constant 2 : index
    %44 = vector.load %arg4[%c2_56, %c0_57, %c1_58, %c2_59] : memref<4x2x20x20xf32, #tpu.memory_space<vmem>>, vector<1x2x18x18xf32>
    %45 = vector.shape_cast %44 : vector<1x2x18x18xf32> to vector<2x18x18xf32>
    %c2_60 = arith.constant 2 : index
    %c0_61 = arith.constant 0 : index
    %c1_62 = arith.constant 1 : index
    %c0_63 = arith.constant 0 : index
    %46 = vector.load %arg4[%c2_60, %c0_61, %c1_62, %c0_63] : memref<4x2x20x20xf32, #tpu.memory_space<vmem>>, vector<1x2x18x18xf32>
    %47 = vector.shape_cast %46 : vector<1x2x18x18xf32> to vector<2x18x18xf32>
    %48 = arith.subf %45, %47 : vector<2x18x18xf32>
    %c3_64 = arith.constant 3 : index
    %c0_65 = arith.constant 0 : index
    %c0_66 = arith.constant 0 : index
    %c1_67 = arith.constant 1 : index
    %49 = vector.load %arg4[%c3_64, %c0_65, %c0_66, %c1_67] : memref<4x2x20x20xf32, #tpu.memory_space<vmem>>, vector<1x2x18x18xf32>
    %50 = vector.shape_cast %49 : vector<1x2x18x18xf32> to vector<2x18x18xf32>
    %51 = arith.addf %48, %50 : vector<2x18x18xf32>
    %c3_68 = arith.constant 3 : index
    %c0_69 = arith.constant 0 : index
    %c2_70 = arith.constant 2 : index
    %c1_71 = arith.constant 1 : index
    %52 = vector.load %arg4[%c3_68, %c0_69, %c2_70, %c1_71] : memref<4x2x20x20xf32, #tpu.memory_space<vmem>>, vector<1x2x18x18xf32>
    %53 = vector.shape_cast %52 : vector<1x2x18x18xf32> to vector<2x18x18xf32>
    %54 = arith.subf %51, %53 : vector<2x18x18xf32>
    %c0_72 = arith.constant 0 : index
    %c0_73 = arith.constant 0 : index
    %c0_74 = arith.constant 0 : index
    %c0_75 = arith.constant 0 : index
    %55 = vector.load %arg3[%c0_72, %c0_73, %c0_74, %c0_75] : memref<2x2x18x18xf32, #tpu.memory_space<vmem>>, vector<2x1x18x18xf32>
    %56 = vector.shape_cast %55 : vector<2x1x18x18xf32> to vector<2x18x18xf32>
    %57 = vector.shape_cast %43 : vector<2x18x18xf32> to vector<2x1x18x18xf32>
    tpu.vector_store %arg3[%c0_72, %c0_73, %c0_74, %c0_75], %57 {strides = array<i32>} : memref<2x2x18x18xf32, #tpu.memory_space<vmem>>, vector<2x1x18x18xf32>,
    %c0_76 = arith.constant 0 : index
    %c1_77 = arith.constant 1 : index
    %c0_78 = arith.constant 0 : index
    %c0_79 = arith.constant 0 : index
    %58 = vector.load %arg3[%c0_76, %c1_77, %c0_78, %c0_79] : memref<2x2x18x18xf32, #tpu.memory_space<vmem>>, vector<2x1x18x18xf32>
    %59 = vector.shape_cast %58 : vector<2x1x18x18xf32> to vector<2x18x18xf32>
    %60 = vector.shape_cast %54 : vector<2x18x18xf32> to vector<2x1x18x18xf32>
    tpu.vector_store %arg3[%c0_76, %c1_77, %c0_78, %c0_79], %60 {strides = array<i32>} : memref<2x2x18x18xf32, #tpu.memory_space<vmem>>, vector<2x1x18x18xf32>,
    return
  }
  func.func @transform_0(%arg0: i32) -> i32 {
    %c0_i32 = arith.constant 0 : i32
    %c0_i32_0 = arith.constant 0 : i32
    return %c0_i32 : i32
  }
  func.func @transform_1(%arg0: i32) -> (i32, i32, i32, i32) {
    %c0_i32 = arith.constant 0 : i32
    %c0_i32_0 = arith.constant 0 : i32
    %c0_i32_1 = arith.constant 0 : i32
    %c0_i32_2 = arith.constant 0 : i32
    return %arg0, %c0_i32, %c0_i32_0, %c0_i32_1 : i32, i32, i32, i32
  }
  func.func @transform_2(%arg0: i32) -> (i32, i32, i32, i32) {
    %c0_i32 = arith.constant 0 : i32
    %c0_i32_0 = arith.constant 0 : i32
    %c0_i32_1 = arith.constant 0 : i32
    %c0_i32_2 = arith.constant 0 : i32
    return %arg0, %c0_i32, %c0_i32_0, %c0_i32_1 : i32, i32, i32, i32
  }
}

</mosaic_0001>

<bundles_post_ra>
// kernel: tpu_custom_call.1
= control target key start
LH: loop header
LB: loop body
LE: loop exit
PB: predicated region body
PF: predicated region fallthrough
CT: control target
= control target key end

     0   :  { %7 = vsyncpa [#allocation5], 0  ;;  %s858_s0 = inlined_call_operand.hbm [shape: f32[2], index: 0, kind: input, shape index: {}]   ;;  %s859_s1 = inlined_call_operand.hbm [shape: f32[2,8,16,16], index: 1, kind: input, shape index: {}]   ;;  %s860_s2 = inlined_call_operand.vmem [shape: f32[2,2,18,18], index: 2, kind: output, shape index: {}]  }
   0x1   :  { %8 = vsyncpa [#allocation4], 0  ;;  %s539_s11 = scalar_lea.hbm %s858_s0, 16 }
   0x2   :  { %p540_p0 = scmp.ne.s32.totalorder %s858_s0, %s539_s11  ;;  %p543_p1 = scmp.lt.u32.totalorder %s539_s11, %s858_s0 }
   0x4   :  { %p545_p2 = pnand %p543_p1, %p540_p0 }
   0x6   :  { %548 = shalt.err (!%p545_p2)
}
   0x7   :  { %s575_s16 = smov [#allocation3]   ;;  %s576_s19 = smov [#allocation6]  }
   0x8   :  { %16 = dma.hbm_to_smem %s858_s0, 16, %s575_s16, [#allocation5]  }
   0x9   :  { %s22_s20 = sshll.u32 %s576_s19, 4  ;;  %s549_s23 = scalar_lea.hbm %s859_s1, 4096  ;;  %s23_s20 = int_to_ptr.vmem [resolvable:$true] %s22_s20 }
   0xa   :  { %p550_p3 = scmp.ne.s32.totalorder %s859_s1, %s549_s23  ;;  %p553_p4 = scmp.lt.u32.totalorder %s549_s23, %s859_s1 }
   0xc   :  { %p555_p5 = pnand %p553_p4, %p550_p3 }
   0xe   :  { %558 = shalt.err (!%p555_p5)
}
   0xf   :  { %s559_s28 = scalar_lea.vmem %s23_s20, 4096  ;;  %p564_p7 = scmp.lt.s32.totalorder %s23_s20, %s23_s20 }
  0x10   :  { %p560_p6 = scmp.ne.s32.totalorder %s23_s20, %s559_s28  ;;  %p565_p8 = scmp.lt.s32.totalorder %s559_s28, %s559_s28 }
  0x12   :  { %p566_p9 = por %p565_p8, %p564_p7 }
  0x14   :  { %p567_p10 = pnand %p566_p9, %p560_p6 }
  0x16   :  { %570 = shalt.err (!%p567_p10)
}
  0x17   :  { %s577_s0 = smov 128   ;;  %s578_s29 = smov 8  }
  0x18   :  { %28 = dma.hbm_to_vmem [thread:$0]  %s859_s1, 4096, %s23_s20, [#allocation4], %s577_s0, %s577_s0, %s578_s29  }
  0x19   :  { %571 = dma.done.wait [#allocation5], 16  }
  0x1a   :  { %572 = vsyncadd [#allocation5], 4294967280 }
  0x1b   :  { %573 = dma.done.wait [#allocation4], 4096  }
  0x1c   :  { %574 = vsyncadd [#allocation4], 4294963200 }
  0x1d   :  { %35 = sfence }
  0x1e   :  { %vm74_vm0 = vcmask 130048   ;;  %v89_v0 = vld [vmem:[#allocation6 + $0x48] sm:$0xff]  ;;  %v91_v1 = vld [vmem:[#allocation6 + $0x58] sm:$0xff]  ;;  %v88_v2 = vld [vmem:[#allocation6 + $0x40] sm:$0xff]  ;;  %vm129_vm1 = vcmask 162816   ;;  %s625_s4 = sld [smem:[#allocation3]] }
  0x1f   :  { %v99_v3 = vsel %vm74_vm0, %v89_v0, 0.0  ;;  %v100_v4 = vsel %vm74_vm0, %v91_v1, 0.0  ;;  %v90_v5 = vld [vmem:[#allocation6 + $0x50] sm:$0xff]  ;;  %v96_v6 = vsel %vm74_vm0, %v88_v2, 0.0  ;;  %s628_s1 = sld [smem:[#allocation3 + $0x1]]  ;;  %vm132_vm2 = vcmask 158720  }
  0x20   :  { %v101_v7 = vadd.f32 %v100_v4, %v99_v3  ;;  %v97_v8 = vsel %vm74_vm0, %v90_v5, 0.0  ;;  %s579_s5 = smov 2   ;;  %v39_v10 = vld [vmem:[#allocation6 + $0x80] sm:$0xff]  ;;  %v580_v11 = vmov 0.0   ;;  %v54_v12 = vld [vmem:[#allocation6 + $0x90] sm:$0xff]  ;;  %v40_v14 = vld [vmem:[#allocation6 + $0x88] sm:$0xff] }
  0x21   :  { %v98_v9 = vadd.f32 %v97_v8, %v96_v6  ;;  %144 = vst.msk [vmem:[#allocation2 + $0x68] sm:$0xff] %vm129_vm1, %v580_v11  ;;  %130 = vst.msk [vmem:[#allocation2] sm:$0xff] %vm129_vm1, %v580_v11  ;;  %v37_v13 = vld [vmem:[#allocation6] sm:$0xff]  ;;  %v52_v15 = vld [vmem:[#allocation6 + $0x10] sm:$0xff]  ;;  %s581_s6 = smov 1   ;;  %vm171_vm3 = vcmask 146448  }
  0x22   :  { %203 = vrot.lane.b32.xlu1 %v101_v7, %s579_s5  ;;  %145 = vst.msk [vmem:[#allocation2 + $0x70] sm:$0xf] %vm132_vm2, %v580_v11  ;;  %133 = vst.msk [vmem:[#allocation2 + $0x10] sm:$0xf] %vm132_vm2, %v580_v11  ;;  %v55_v16 = vld [vmem:[#allocation6 + $0x98] sm:$0xff]  ;;  %v38_v17 = vld [vmem:[#allocation6 + $0x8] sm:$0xff] }
  0x23   :  { %131 = vst.msk [vmem:[#allocation2 + $0x8] sm:$0xff] %vm129_vm1, %v580_v11  ;;  %134 = vst.msk [vmem:[#allocation2 + $0x18] sm:$0xff] %vm129_vm1, %v580_v11  ;;  %201 = vrot.lane.b32.xlu0 %v98_v9, %s579_s5  ;;  %v53_v19 = vld [vmem:[#allocation6 + $0x18] sm:$0xff]  ;;  %v93_v29 = vld [vmem:[#allocation6 + $0xc8] sm:$0xff]  ;;  %s582_s7 = smov 126   ;;  %vm479_vm4 = vcmask 146432  }
  0x24   :  { %135 = vst.msk [vmem:[#allocation2 + $0x20] sm:$0xff] %vm129_vm1, %v580_v11  ;;  %137 = vst.msk [vmem:[#allocation2 + $0x30] sm:$0xff] %vm129_vm1, %v580_v11  ;;  %v41_v18 = vstv %s625_s4  ;;  %v95_v32 = vld [vmem:[#allocation6 + $0xd8] sm:$0xff]  ;;  %v92_v33 = vld [vmem:[#allocation6 + $0xc0] sm:$0xff]  ;;  %v105_v37 = vsel %vm74_vm0, %v93_v29, 0.0  ;;  %vm482_vm5 = vcmask 140288  }
  0x25   :  { %136 = vst.msk [vmem:[#allocation2 + $0x28] sm:$0xf] %vm132_vm2, %v580_v11  ;;  %139 = vst.msk [vmem:[#allocation2 + $0x40] sm:$0xf] %vm132_vm2, %v580_v11  ;;  %v44_v20 = vmul.f32 %v41_v18, %v39_v10  ;;  %v56_v21 = vstv %s628_s1  ;;  %v42_v22 = vmul.f32 %v41_v18, %v37_v13  ;;  %v45_v23 = vmul.f32 %v41_v18, %v40_v14  ;;  %v94_v34 = vld [vmem:[#allocation6 + $0xd0] sm:$0xff]  ;;  %v66_v41 = vld [vmem:[#allocation6 + $0x20] sm:$0xff] }
  0x26   :  { %138 = vst.msk [vmem:[#allocation2 + $0x38] sm:$0xff] %vm129_vm1, %v580_v11  ;;  %140 = vst.msk [vmem:[#allocation2 + $0x48] sm:$0xff] %vm129_vm1, %v580_v11  ;;  %v59_v24 = vmul.f32 %v56_v21, %v54_v12  ;;  %v57_v25 = vmul.f32 %v56_v21, %v52_v15  ;;  %v60_v26 = vmul.f32 %v56_v21, %v55_v16  ;;  %v106_v38 = vsel %vm74_vm0, %v95_v32, 0.0  ;;  %v68_v42 = vld [vmem:[#allocation6 + $0x30] sm:$0xff]  ;;  %v67_v43 = vld [vmem:[#allocation6 + $0x28] sm:$0xff] }
  0x27   :  { %141 = vst.msk [vmem:[#allocation2 + $0x50] sm:$0xff] %vm129_vm1, %v580_v11  ;;  %143 = vst.msk [vmem:[#allocation2 + $0x60] sm:$0xff] %vm129_vm1, %v580_v11  ;;  %v43_v27 = vmul.f32 %v41_v18, %v38_v17  ;;  %v58_v28 = vmul.f32 %v56_v21, %v53_v19  ;;  %v102_v39 = vsel %vm74_vm0, %v92_v33, 0.0  ;;  %v103_v40 = vsel %vm74_vm0, %v94_v34, 0.0  ;;  %v69_v44 = vld [vmem:[#allocation6 + $0x38] sm:$0xff]  ;;  %v71_v51 = vld [vmem:[#allocation6 + $0xa8] sm:$0xff] }
  0x28   :  { %142 = vst.msk [vmem:[#allocation2 + $0x58] sm:$0xf] %vm132_vm2, %v580_v11  ;;  %148 = vst.msk [vmem:[#allocation2 + $0x88] sm:$0xf] %vm132_vm2, %v580_v11  ;;  %v63_v30 = vadd.f32 %v59_v24, %v44_v20  ;;  %v61_v31 = vadd.f32 %v57_v25, %v42_v22  ;;  %v64_v35 = vadd.f32 %v60_v26, %v45_v23  ;;  %v75_v47 = vsel %vm74_vm0, %v66_v41, 0.0  ;;  %v73_v52 = vld [vmem:[#allocation6 + $0xb8] sm:$0xff] }
  0x29   :  { %146 = vst.msk [vmem:[#allocation2 + $0x78] sm:$0xff] %vm129_vm1, %v580_v11  ;;  %147 = vst.msk [vmem:[#allocation2 + $0x80] sm:$0xff] %vm129_vm1, %v580_v11  ;;  %v62_v36 = vadd.f32 %v58_v28, %v43_v27  ;;  %v107_v45 = vadd.f32 %v106_v38, %v105_v37  ;;  %v104_v46 = vadd.f32 %v103_v40, %v102_v39  ;;  %v76_v48 = vsel %vm74_vm0, %v68_v42, 0.0  ;;  %v70_v53 = vld [vmem:[#allocation6 + $0xa0] sm:$0xff]  ;;  %v72_v54 = vld [vmem:[#allocation6 + $0xb0] sm:$0xff] }
  0x2a   :  { %149 = vst.msk [vmem:[#allocation2 + $0x90] sm:$0xff] %vm129_vm1, %v580_v11  ;;  %150 = vst.msk [vmem:[#allocation2 + $0x98] sm:$0xff] %vm129_vm1, %v580_v11  ;;  %163 = vrot.lane.b32.xlu1 %v63_v30, %s579_s5  ;;  %159 = vrot.lane.b32.xlu0 %v61_v31, %s579_s5  ;;  %v78_v49 = vsel %vm74_vm0, %v67_v43, 0.0  ;;  %v79_v50 = vsel %vm74_vm0, %v69_v44, 0.0  ;;  %v77_v55 = vadd.f32 %v76_v48, %v75_v47  ;;  %v84_v57 = vsel %vm74_vm0, %v71_v51, 0.0  ;;  %v109_v61 = vld [vmem:[#allocation6 + $0x60] sm:$0xff] }
  0x2b   :  { %151 = vst.msk [vmem:[#allocation2 + $0xa0] sm:$0xf] %vm132_vm2, %v580_v11  ;;  %154 = vst.msk [vmem:[#allocation2 + $0xb8] sm:$0xf] %vm132_vm2, %v580_v11  ;;  %v80_v56 = vadd.f32 %v79_v50, %v78_v49  ;;  %v85_v58 = vsel %vm74_vm0, %v73_v52, 0.0  ;;  %v81_v59 = vsel %vm74_vm0, %v70_v53, 0.0 }
  0x2c   :  { %152 = vst.msk [vmem:[#allocation2 + $0xa8] sm:$0xff] %vm129_vm1, %v580_v11  ;;  %153 = vst.msk [vmem:[#allocation2 + $0xb0] sm:$0xff] %vm129_vm1, %v580_v11  ;;  %v82_v60 = vsel %vm74_vm0, %v72_v54, 0.0  ;;  %v111_v62 = vld [vmem:[#allocation6 + $0x70] sm:$0xff]  ;;  %v110_v63 = vld [vmem:[#allocation6 + $0x68] sm:$0xff]  ;;  %v86_v1 = vadd.f32 %v85_v58, %v84_v57  ;;  %v117_v3 = vsel %vm74_vm0, %v109_v61, 0.0 }
  0x2d   :  { %v112_v0 = vld [vmem:[#allocation6 + $0x78] sm:$0xff]  ;;  %v83_v2 = vadd.f32 %v82_v60, %v81_v59  ;;  %v118_v4 = vsel %vm74_vm0, %v111_v62, 0.0  ;;  %v120_v5 = vsel %vm74_vm0, %v110_v63, 0.0  ;;  %v114_v7 = vld [vmem:[#allocation6 + $0xe8] sm:$0xff]  ;;  %v113_v9 = vld [vmem:[#allocation6 + $0xe0] sm:$0xff] }
  0x2e   :  { %165 = vrot.lane.b32.xlu1 %v64_v35, %s579_s5  ;;  %161 = vrot.lane.b32.xlu0 %v62_v36, %s579_s5  ;;  %v121_v6 = vsel %vm74_vm0, %v112_v0, 0.0  ;;  %v116_v8 = vld [vmem:[#allocation6 + $0xf8] sm:$0xff]  ;;  %v115_v10 = vld [vmem:[#allocation6 + $0xf0] sm:$0xff]  ;;  %v119_v11 = vadd.f32 %v118_v4, %v117_v3  ;;  %v126_v13 = vsel %vm74_vm0, %v114_v7, 0.0  ;;  %v123_v15 = vsel %vm74_vm0, %v113_v9, 0.0 }
  0x2f   :  { %v122_v12 = vadd.f32 %v121_v6, %v120_v5  ;;  %v127_v14 = vsel %vm74_vm0, %v116_v8, 0.0  ;;  %v124_v16 = vsel %vm74_vm0, %v115_v10, 0.0  ;;  %v313_v19 = vld [vmem:[#allocation2 + $0x42] sm:$0x3]  ;;  %v316_v20 = vld [vmem:[#allocation2 + $0x5a] sm:$0x3] }
  0x30   :  { %v128_v17 = vadd.f32 %v127_v14, %v126_v13  ;;  %v125_v18 = vadd.f32 %v124_v16, %v123_v15 }
  0x32   :  { %207 = vrot.lane.b32.xlu1 %v107_v45, %s579_s5  ;;  %205 = vrot.lane.b32.xlu0 %v104_v46, %s579_s5  ;;  %v421_v21 = vld [vmem:[#allocation2 + $0xa2] sm:$0x3]  ;;  %v424_v6 = vld [vmem:[#allocation2 + $0xba] sm:$0x3] }
  0x36   :  { %180 = vrot.lane.b32.xlu0 %v77_v55, %s579_s5  ;;  %182 = vrot.lane.b32.xlu1 %v80_v56, %s579_s5 }
  0x3a   :  { %186 = vrot.lane.b32.xlu1 %v86_v1, %s579_s5  ;;  %184 = vrot.lane.b32.xlu0 %v83_v2, %s579_s5 }
  0x3e   :  { %222 = vrot.lane.b32.xlu0 %v119_v11, %s579_s5  ;;  %224 = vrot.lane.b32.xlu1 %v122_v12, %s579_s5 }
  0x42   :  { %228 = vrot.lane.b32.xlu1 %v128_v17, %s579_s5  ;;  %226 = vrot.lane.b32.xlu0 %v125_v18, %s579_s5 }
  0x46   :  { %327 = vrot.lane.b32.xlu0 %v313_v19, %s581_s6  ;;  %333 = vrot.lane.b32.xlu1 %v316_v20, %s581_s6 }
  0x4a   :  { %435 = vrot.lane.b32.xlu0 %v421_v21, %s581_s6 }
  0x94   :  { %v204_v22 = vpop.permute.xlu1 %203 }
  0x95   :  { %215 = vst.msk [vmem:[#allocation2 + $0x6a] sm:$0xff] %vm171_vm3, %v204_v22  ;;  %v202_v23 = vpop.permute.xlu0 %201 }
  0x96   :  { %214 = vst.msk [vmem:[#allocation2 + $0x62] sm:$0xff] %vm171_vm3, %v202_v23 }
  0x9c   :  { %v164_v24 = vpop.permute.xlu1 %163  ;;  %v160_v25 = vpop.permute.xlu0 %159  ;;  %v707_v28 = vld [vmem:[#allocation2 + $0x71] sm:$0x3] }
  0x9d   :  { %v697_v26 = vld [vmem:[#allocation2 + $0x69] sm:$0xff]  ;;  %v699_v27 = vld [vmem:[#allocation2 + $0x61] sm:$0xff]  ;;  %174 = vst.msk [vmem:[#allocation2 + $0x1a] sm:$0xff] %vm171_vm3, %v164_v24  ;;  %172 = vst.msk [vmem:[#allocation2 + $0x2] sm:$0xff] %vm171_vm3, %v160_v25 }
  0x9e   :  { %361 = vrot.lane.b32.xlu1 %v697_v26, %s579_s5  ;;  %359 = vrot.lane.b32.xlu0 %v699_v27, %s579_s5 }
  0xa0   :  { %v166_v29 = vpop.permute.xlu1 %165  ;;  %v162_v30 = vpop.permute.xlu0 %161 }
  0xa1   :  { %175 = vst.msk [vmem:[#allocation2 + $0x22] sm:$0xff] %vm171_vm3, %v166_v29  ;;  %173 = vst.msk [vmem:[#allocation2 + $0xa] sm:$0xff] %vm171_vm3, %v162_v30 }
  0xa2   :  { %363 = vrot.lane.b32.xlu0 %v707_v28, %s579_s5 }
  0xa4   :  { %v208_v31 = vpop.permute.xlu1 %207  ;;  %v206_v32 = vpop.permute.xlu0 %205  ;;  %v752_v61 = vld [vmem:[#allocation2 + $0x1] sm:$0xff]  ;;  %v770_v4 = vld [vmem:[#allocation2 + $0x19] sm:$0xff] }
  0xa5   :  { %217 = vst.msk [vmem:[#allocation2 + $0x82] sm:$0xff] %vm171_vm3, %v208_v31  ;;  %216 = vst.msk [vmem:[#allocation2 + $0x7a] sm:$0xff] %vm171_vm3, %v206_v32 }
  0xa8   :  { %v181_v33 = vpop.permute.xlu0 %180  ;;  %v183_v34 = vpop.permute.xlu1 %182  ;;  %v757_v63 = vld [vmem:[#allocation2 + $0x11] sm:$0x3]  ;;  %v762_v1 = vld [vmem:[#allocation2 + $0x21] sm:$0xff]  ;;  %v764_v2 = vld [vmem:[#allocation2 + $0x9] sm:$0xff] }
  0xa9   :  { %193 = vst.msk [vmem:[#allocation2 + $0x32] sm:$0xff] %vm171_vm3, %v181_v33  ;;  %194 = vst.msk [vmem:[#allocation2 + $0x3a] sm:$0xff] %vm171_vm3, %v183_v34  ;;  %v775_v5 = vld [vmem:[#allocation2 + $0x29] sm:$0x3] }
  0xac   :  { %v717_v35 = vld [vmem:[#allocation2 + $0x81] sm:$0xff]  ;;  %v719_v36 = vld [vmem:[#allocation2 + $0x79] sm:$0xff]  ;;  %v187_v37 = vpop.permute.xlu1 %186  ;;  %v185_v38 = vpop.permute.xlu0 %184  ;;  %v727_v39 = vld [vmem:[#allocation2 + $0x89] sm:$0x3] }
  0xad   :  { %367 = vrot.lane.b32.xlu0 %v717_v35, %s579_s5  ;;  %365 = vrot.lane.b32.xlu1 %v719_v36, %s579_s5  ;;  %196 = vst.msk [vmem:[#allocation2 + $0x52] sm:$0xff] %vm171_vm3, %v187_v37  ;;  %195 = vst.msk [vmem:[#allocation2 + $0x4a] sm:$0xff] %vm171_vm3, %v185_v38 }
  0xb0   :  { %v275_v40 = vld [vmem:[#allocation2 + $0x30] sm:$0xff]  ;;  %v223_v41 = vpop.permute.xlu0 %222  ;;  %v225_v42 = vpop.permute.xlu1 %224  ;;  %v276_v43 = vld [vmem:[#allocation2 + $0x38] sm:$0xff]  ;;  %v277_v44 = vld [vmem:[#allocation2 + $0x40] sm:$0x3] }
  0xb1   :  { %369 = vrot.lane.b32.xlu1 %v727_v39, %s579_s5  ;;  %287 = vrot.lane.b32.xlu0 %v275_v40, %s581_s6  ;;  %235 = vst.msk [vmem:[#allocation2 + $0x92] sm:$0xff] %vm171_vm3, %v223_v41  ;;  %236 = vst.msk [vmem:[#allocation2 + $0x9a] sm:$0xff] %vm171_vm3, %v225_v42  ;;  %v311_v56 = vld [vmem:[#allocation2 + $0x32] sm:$0xff]  ;;  %v312_v58 = vld [vmem:[#allocation2 + $0x3a] sm:$0xff] }
  0xb4   :  { %v229_v45 = vpop.permute.xlu1 %228  ;;  %v227_v46 = vpop.permute.xlu0 %226  ;;  %v279_v47 = vld [vmem:[#allocation2 + $0x50] sm:$0xff]  ;;  %v278_v48 = vld [vmem:[#allocation2 + $0x48] sm:$0xff]  ;;  %v280_v49 = vld [vmem:[#allocation2 + $0x58] sm:$0x3] }
  0xb5   :  { %289 = vrot.lane.b32.xlu1 %v276_v43, %s581_s6  ;;  %291 = vrot.lane.b32.xlu0 %v277_v44, %s581_s6  ;;  %238 = vst.msk [vmem:[#allocation2 + $0xb2] sm:$0xff] %vm171_vm3, %v229_v45  ;;  %237 = vst.msk [vmem:[#allocation2 + $0xaa] sm:$0xff] %vm171_vm3, %v227_v46  ;;  %v315_v57 = vld [vmem:[#allocation2 + $0x52] sm:$0xff]  ;;  %v314_v60 = vld [vmem:[#allocation2 + $0x4a] sm:$0xff] }
  0xb8   :  { %v383_v50 = vld [vmem:[#allocation2 + $0x90] sm:$0xff]  ;;  %v384_v51 = vld [vmem:[#allocation2 + $0x98] sm:$0xff]  ;;  %v385_v52 = vld [vmem:[#allocation2 + $0xa0] sm:$0x3]  ;;  %v328_v7 = vpop.permute.xlu0 %327  ;;  %v780_v9 = vpop.permute.xlu1 %333 }
  0xb9   :  { %295 = vrot.lane.b32.xlu0 %v279_v47, %s581_s6  ;;  %293 = vrot.lane.b32.xlu1 %v278_v48, %s581_s6  ;;  %v419_v59 = vld [vmem:[#allocation2 + $0x92] sm:$0xff]  ;;  %v420_v62 = vld [vmem:[#allocation2 + $0x9a] sm:$0xff] }
  0xbc   :  { %v387_v53 = vld [vmem:[#allocation2 + $0xb0] sm:$0xff]  ;;  %v386_v54 = vld [vmem:[#allocation2 + $0xa8] sm:$0xff]  ;;  %v388_v55 = vld [vmem:[#allocation2 + $0xb8] sm:$0x3]  ;;  %v436_v8 = vpop.permute.xlu0 %435 }
  0xbd   :  { %297 = vrot.lane.b32.xlu1 %v280_v49, %s581_s6  ;;  %395 = vrot.lane.b32.xlu0 %v383_v50, %s581_s6  ;;  %v422_v0 = vld [vmem:[#allocation2 + $0xaa] sm:$0xff]  ;;  %v423_v3 = vld [vmem:[#allocation2 + $0xb2] sm:$0xff] }
  0xc1   :  { %397 = vrot.lane.b32.xlu1 %v384_v51, %s581_s6  ;;  %399 = vrot.lane.b32.xlu0 %v385_v52, %s581_s6 }
  0xc5   :  { %403 = vrot.lane.b32.xlu0 %v387_v53, %s581_s6  ;;  %401 = vrot.lane.b32.xlu1 %v386_v54, %s581_s6 }
  0xc9   :  { %323 = vrot.lane.b32.xlu0 %v311_v56, %s581_s6  ;;  %405 = vrot.lane.b32.xlu1 %v388_v55, %s581_s6 }
  0xcd   :  { %331 = vrot.lane.b32.xlu0 %v315_v57, %s581_s6  ;;  %325 = vrot.lane.b32.xlu1 %v312_v58, %s581_s6 }
  0xd1   :  { %431 = vrot.lane.b32.xlu0 %v419_v59, %s581_s6  ;;  %329 = vrot.lane.b32.xlu1 %v314_v60, %s581_s6 }
  0xd5   :  { %251 = vrot.lane.b32.xlu0 %v752_v61, %s579_s5  ;;  %433 = vrot.lane.b32.xlu1 %v420_v62, %s581_s6 }
  0xd9   :  { %255 = vrot.lane.b32.xlu0 %v757_v63, %s579_s5  ;;  %437 = vrot.lane.b32.xlu1 %v422_v0, %s581_s6 }
  0xdd   :  { %259 = vrot.lane.b32.xlu0 %v762_v1, %s579_s5  ;;  %253 = vrot.lane.b32.xlu1 %v764_v2, %s579_s5 }
  0xe1   :  { %439 = vrot.lane.b32.xlu0 %v423_v3, %s581_s6  ;;  %257 = vrot.lane.b32.xlu1 %v770_v4, %s579_s5 }
  0xe5   :  { %261 = vrot.lane.b32.xlu1 %v775_v5, %s579_s5 }
  0xe9   :  { %441 = vrot.lane.b32.xlu1 %v424_v6, %s581_s6 }
 0x110   :  { %v360_v10 = vpop.permute.xlu0 %359  ;;  %v362_v11 = vpop.permute.xlu1 %361 }
 0x111   :  { %v377_v34 = vsub.f32 %v699_v27, %v360_v10  ;;  %v378_v42 = vsub.f32 %v697_v26, %v362_v11 }
 0x114   :  { %v364_v12 = vpop.permute.xlu0 %363 }
 0x115   :  { %v379_v37 = vsub.f32 %v707_v28, %v364_v12 }
 0x11f   :  { %v366_v13 = vpop.permute.xlu1 %365  ;;  %v368_v14 = vpop.permute.xlu0 %367 }
 0x120   :  { %v380_v48 = vsub.f32 %v719_v36, %v366_v13 }
 0x123   :  { %v782_v15 = vpop.permute.xlu1 %369  ;;  %v288_v16 = vpop.permute.xlu0 %287 }
 0x127   :  { %v290_v17 = vpop.permute.xlu1 %289  ;;  %v292_v18 = vpop.permute.xlu0 %291 }
 0x12b   :  { %v294_v19 = vpop.permute.xlu1 %293  ;;  %v296_v20 = vpop.permute.xlu0 %295 }
 0x12f   :  { %v298_v21 = vpop.permute.xlu1 %297  ;;  %v396_v22 = vpop.permute.xlu0 %395 }
 0x130   :  { %v413_v38 = vadd.f32 %v396_v22, %v377_v34 }
 0x133   :  { %v398_v23 = vpop.permute.xlu1 %397  ;;  %v400_v24 = vpop.permute.xlu0 %399 }
 0x134   :  { %v415_v43 = vadd.f32 %v400_v24, %v379_v37  ;;  %v414_v45 = vadd.f32 %v398_v23, %v378_v42 }
 0x136   :  { %v451_v49 = vsub.f32 %v415_v43, %v436_v8 }
 0x137   :  { %v402_v25 = vpop.permute.xlu1 %401  ;;  %v404_v29 = vpop.permute.xlu0 %403 }
 0x138   :  { %v416_v28 = vadd.f32 %v402_v25, %v380_v48 }
 0x13b   :  { %v406_v30 = vpop.permute.xlu1 %405  ;;  %v324_v31 = vpop.permute.xlu0 %323 }
 0x13f   :  { %v326_v32 = vpop.permute.xlu1 %325  ;;  %v332_v33 = vpop.permute.xlu0 %331 }
 0x143   :  { %v330_v40 = vpop.permute.xlu1 %329  ;;  %v432_v41 = vpop.permute.xlu0 %431 }
 0x144   :  { %v449_v44 = vsub.f32 %v413_v38, %v432_v41 }
 0x146   :  { %493 = vrot.lane.b32.xlu0 %v449_v44, %s582_s7 }
 0x147   :  { %v434_v46 = vpop.permute.xlu1 %433  ;;  %v252_v47 = vpop.permute.xlu0 %251 }
 0x148   :  { %v450_v50 = vsub.f32 %v414_v45, %v434_v46  ;;  %v269_v27 = vsub.f32 %v752_v61, %v252_v47 }
 0x14a   :  { %v305_v51 = vadd.f32 %v288_v16, %v269_v27  ;;  %495 = vrot.lane.b32.xlu1 %v450_v50, %s582_s7  ;;  %497 = vrot.lane.b32.xlu0 %v451_v49, %s582_s7 }
 0x14b   :  { %v438_v26 = vpop.permute.xlu1 %437  ;;  %v256_v52 = vpop.permute.xlu0 %255 }
 0x14c   :  { %v452_v53 = vsub.f32 %v416_v28, %v438_v26  ;;  %v271_v54 = vsub.f32 %v757_v63, %v256_v52  ;;  %v341_v55 = vsub.f32 %v305_v51, %v324_v31  ;;  %v381_v63 = vsub.f32 %v717_v35, %v368_v14 }
 0x14d   :  { %v382_v35 = vsub.f32 %v727_v39, %v782_v15 }
 0x14e   :  { %v307_v56 = vadd.f32 %v292_v18, %v271_v54  ;;  %499 = vrot.lane.b32.xlu1 %v452_v53, %s582_s7  ;;  %461 = vrot.lane.b32.xlu0 %v341_v55, %s582_s7  ;;  %v417_v11 = vadd.f32 %v404_v29, %v381_v63 }
 0x14f   :  { %v254_v36 = vpop.permute.xlu1 %253  ;;  %v260_v57 = vpop.permute.xlu0 %259 }
 0x150   :  { %v270_v58 = vsub.f32 %v764_v2, %v254_v36  ;;  %v273_v59 = vsub.f32 %v762_v1, %v260_v57  ;;  %v343_v60 = vsub.f32 %v307_v56, %v328_v7 }
 0x152   :  { %v306_v61 = vadd.f32 %v290_v17, %v270_v58  ;;  %v309_v62 = vadd.f32 %v296_v20, %v273_v59  ;;  %465 = vrot.lane.b32.xlu0 %v343_v60, %s582_s7  ;;  %v418_v17 = vadd.f32 %v406_v30, %v382_v35 }
 0x153   :  { %v258_v0 = vpop.permute.xlu1 %257  ;;  %v440_v10 = vpop.permute.xlu0 %439 }
 0x154   :  { %v272_v3 = vsub.f32 %v770_v4, %v258_v0  ;;  %v342_v6 = vsub.f32 %v306_v61, %v326_v32  ;;  %v345_v8 = vsub.f32 %v309_v62, %v332_v33  ;;  %v453_v2 = vsub.f32 %v417_v11, %v440_v10 }
 0x156   :  { %v308_v12 = vadd.f32 %v294_v19, %v272_v3  ;;  %463 = vrot.lane.b32.xlu1 %v342_v6, %s582_s7  ;;  %469 = vrot.lane.b32.xlu0 %v345_v8, %s582_s7 }
 0x157   :  { %v262_v1 = vpop.permute.xlu1 %261 }
 0x158   :  { %v274_v7 = vsub.f32 %v775_v5, %v262_v1  ;;  %v344_v13 = vsub.f32 %v308_v12, %v330_v40 }
 0x15a   :  { %v310_v16 = vadd.f32 %v298_v21, %v274_v7  ;;  %467 = vrot.lane.b32.xlu1 %v344_v13, %s582_s7  ;;  %501 = vrot.lane.b32.xlu0 %v453_v2, %s582_s7 }
 0x15b   :  { %v442_v14 = vpop.permute.xlu1 %441 }
 0x15c   :  { %v346_v4 = vsub.f32 %v310_v16, %v780_v9  ;;  %v454_v18 = vsub.f32 %v418_v17, %v442_v14 }
 0x15e   :  { %471 = vrot.lane.b32.xlu1 %v346_v4, %s582_s7 }
 0x162   :  { %503 = vrot.lane.b32.xlu1 %v454_v18, %s582_s7 }
 0x1b8   :  { %v494_v5 = vpop.permute.xlu0 %493 }
 0x1b9   :  { %525 = vst.msk [vmem:[%s860_s2 + $0x18] sm:$0xff] %vm479_vm4, %v494_v5 }
 0x1bc   :  { %v496_v19 = vpop.permute.xlu1 %495  ;;  %v498_v20 = vpop.permute.xlu0 %497 }
 0x1bd   :  { %526 = vst.msk [vmem:[%s860_s2 + $0x20] sm:$0xff] %vm479_vm4, %v496_v19 }
 0x1be   :  { %527 = vst.msk [vmem:[%s860_s2 + $0x28] sm:$0x3] %vm482_vm5, %v498_v20 }
 0x1c0   :  { %v500_v39 = vpop.permute.xlu1 %499  ;;  %v462_v9 = vpop.permute.xlu0 %461 }
 0x1c1   :  { %528 = vst.msk [vmem:[%s860_s2 + $0x48] sm:$0xff] %vm479_vm4, %v500_v39  ;;  %480 = vst.msk [vmem:[%s860_s2] sm:$0xff] %vm479_vm4, %v462_v9 }
 0x1c4   :  { %v466_v15 = vpop.permute.xlu0 %465 }
 0x1c5   :  { %483 = vst.msk [vmem:[%s860_s2 + $0x10] sm:$0x3] %vm482_vm5, %v466_v15 }
 0x1c8   :  { %v464_v21 = vpop.permute.xlu1 %463  ;;  %v470_v22 = vpop.permute.xlu0 %469 }
 0x1c9   :  { %481 = vst.msk [vmem:[%s860_s2 + $0x8] sm:$0xff] %vm479_vm4, %v464_v21  ;;  %485 = vst.msk [vmem:[%s860_s2 + $0x38] sm:$0xff] %vm479_vm4, %v470_v22 }
 0x1cc   :  { %v468_v23 = vpop.permute.xlu1 %467  ;;  %v502_v24 = vpop.permute.xlu0 %501 }
 0x1cd   :  { %484 = vst.msk [vmem:[%s860_s2 + $0x30] sm:$0xff] %vm479_vm4, %v468_v23  ;;  %529 = vst.msk [vmem:[%s860_s2 + $0x50] sm:$0xff] %vm479_vm4, %v502_v24 }
 0x1d0   :  { %v472_v25 = vpop.permute.xlu1 %471 }
 0x1d1   :  { %486 = vst.msk [vmem:[%s860_s2 + $0x40] sm:$0x3] %vm482_vm5, %v472_v25 }
 0x1d4   :  { %v504_v29 = vpop.permute.xlu1 %503 }
 0x1d5   :  { %530 = vst.msk [vmem:[%s860_s2 + $0x58] sm:$0x3] %vm482_vm5, %v504_v29 }
 0x1d6   :  { %522 = vsyncpa [#allocation4], 1 }
 0x1d7   :  { %523 = vsyncpa [#allocation5], 1 }

</bundles_post_ra>
